<compile_context>
chip_gen: v5e
topology: v5e:2x2
jax: 0.10.0
libtpu: 0.0.40
codegen_flags: <defaults>
</compile_context>

<pallas_src>
import functools

import jax
import jax.numpy as jnp
from jax.experimental import pallas as pl
from jax.experimental.pallas import tpu as pltpu


def _bert_output_kernel(x_ref, w_ref, b_ref, res_ref, gamma_ref, beta_ref,
                        o_ref, acc_ref, *, eps):
    # x_ref:     (tm, tk)  intermediate activations (row tile, K chunk)
    # w_ref:     (tk, N)   dense weight chunk, [in_features, out_features]
    # b_ref:     (1,  N)   dense bias
    # res_ref:   (tm, N)   residual (input_tensor row tile)
    # gamma/beta:(1,  N)   LayerNorm affine params
    # o_ref:     (tm, N)   output row tile
    # acc_ref:   (tm, N)   f32 accumulator scratch (persists across k steps)
    k = pl.program_id(1)

    @pl.when(k == 0)
    def _():
        acc_ref[...] = jnp.zeros_like(acc_ref)

    # MXU matmul in the operands' native dtype (bf16 or f32), f32 accumulate.
    acc_ref[...] += jnp.dot(x_ref[...], w_ref[...],
                            preferred_element_type=jnp.float32)

    @pl.when(k == pl.num_programs(1) - 1)
    def _():
        # Epilogue (f32, VPU/XLU/EUP): bias + residual add, then LayerNorm.
        # TODO(synk): training-mode dropout (stochastic mask) is not applied
        # here; this is the eval-mode (identity dropout) forward.
        y = (acc_ref[...]
             + res_ref[...].astype(jnp.float32)
             + b_ref[...].astype(jnp.float32))

        # One-pass statistics: the two lane reductions are independent, and
        # the centered subtract only happens once (in the normalize step).
        mean = jnp.mean(y, axis=-1, keepdims=True)
        mean_sq = jnp.mean(y * y, axis=-1, keepdims=True)
        var = jnp.maximum(mean_sq - mean * mean, 0.0)
        inv = jax.lax.rsqrt(var + eps)

        gamma = gamma_ref[...].astype(jnp.float32)
        beta = beta_ref[...].astype(jnp.float32)
        o_ref[...] = ((y - mean) * inv * gamma + beta).astype(o_ref.dtype)


def _round_up(x, m):
    return ((x + m - 1) // m) * m


def _plan(M, K, N, x_sz, w_sz, res_sz, out_sz, tm_req, tk_req, vmem_req):
    """Pick (tm, tk, vmem_limit_bytes) from actual buffer sizes + chip VMEM."""
    try:
        vmem_cap = int(pltpu.get_tpu_info().vmem_capacity_bytes)
    except Exception:
        vmem_cap = 64 << 20  # conservative fallback (v7x per-TC VMEM)
    budget = int(vmem_cap * 0.7)  # headroom for Mosaic internals / alignment

    m_ceil = max(8, _round_up(M, 8))

    if tm_req is None:
        # Big tiles amortize the ~0.35us per-grid-step overhead; back off for
        # f32 activations on 64 MiB/TC parts (v7x).
        tm_req = 512 if (vmem_cap >= (100 << 20) or x_sz <= 2) else 256
    tm = max(8, _round_up(min(int(tm_req), m_ceil), 8))
    # Keep >= 2 row tiles whenever there is more than one sublane of rows so a
    # 2-TensorCore chip (v7x) can shard the "parallel" row axis.
    if tm >= m_ceil and m_ceil > 8:
        tm = max(8, _round_up(pl.cdiv(m_ceil, 2), 8))

    def est(tm_, tk_, wbuf):
        return (wbuf * tk_ * N * w_sz       # weight buffer(s)
                + 2 * tm_ * tk_ * x_sz      # x tile (double buffered)
                + 2 * tm_ * N * res_sz      # residual tile
                + 2 * tm_ * N * out_sz      # output tile
                + tm_ * N * 4               # f32 accumulator scratch
                + 3 * 8 * N * 4)            # bias/gamma/beta (sublane-padded)

    if tk_req is not None:
        tk = int(tk_req)
    elif est(tm, K, 1) <= budget or K % 128 != 0:
        tk = K  # whole weight resident in VMEM
    else:
        # Stream the weight along K: largest multiple-of-128 divisor of K that
        # fits with double buffering; shrink tm further if even tk=128 is big.
        tk = 128
        for cand in sorted((d for d in range(128, K, 128) if K % d == 0),
                           reverse=True):
            if est(tm, cand, 2) <= budget:
                tk = cand
                break
        while tm > 128 and est(tm, tk, 2) > budget:
            tm = max(128, _round_up(tm // 2, 8))

    # K tiles must evenly divide K (padding along the contraction axis would
    # corrupt the accumulator) and be lane-aligned.
    if tk != K and (tk % 128 != 0 or K % tk != 0):
        tk = K
    wbuf = 1 if tk == K else 2

    if vmem_req is None:
        vmem_limit = min(vmem_cap,
                         max(32 << 20, int(1.5 * est(tm, tk, wbuf)) + (4 << 20)))
    else:
        vmem_limit = int(vmem_req)
    return tm, tk, vmem_limit


def bert_output(hidden_states, input_tensor, w, b, gamma, beta, *,
                eps=1e-12, tm=None, tk=None, matmul_dtype=None,
                vmem_limit_bytes=None):
    """Fused BertOutput forward (eval mode: dropout is identity).

    hidden_states: [B, S, K]  intermediate activations
    input_tensor:  [B, S, N]  residual
    w:             [K, N]     dense weight (PyTorch nn.Linear weight pre-transposed)
    b, gamma, beta: [N]
    matmul_dtype:  optional dtype (e.g. jnp.bfloat16) the matmul operands are
                   cast to; halves x/W HBM+VMEM traffic (main lever on
                   v6e/v7x).  MXU accumulation stays f32 either way.
    """
    B, S, K = hidden_states.shape
    N = input_tensor.shape[-1]
    M = B * S
    out_dtype = input_tensor.dtype

    x2d = hidden_states.reshape(M, K)
    res2d = input_tensor.reshape(M, N)
    if matmul_dtype is not None:
        x2d = x2d.astype(matmul_dtype)
        w = w.astype(matmul_dtype)
    elif x2d.dtype != w.dtype:
        ct = jnp.result_type(x2d.dtype, w.dtype)
        x2d, w = x2d.astype(ct), w.astype(ct)

    b2d = b.reshape(1, N)
    g2d = gamma.reshape(1, N)
    beta2d = beta.reshape(1, N)

    tm_, tk_, vmem_limit = _plan(
        M, K, N,
        x2d.dtype.itemsize, w.dtype.itemsize, res2d.dtype.itemsize,
        jnp.dtype(out_dtype).itemsize, tm, tk, vmem_limit_bytes)

    grid_m = pl.cdiv(M, tm_)   # partial tail tile: Pallas masks the OOB writes
    grid_k = K // tk_          # tk_ always divides K

    def _param_spec():
        # Grid-invariant (1, N) params: constant index map + single buffer.
        return pl.BlockSpec((1, N), lambda i, k: (0, 0),
                            pipeline_mode=pl.Buffered(1))

    if grid_k == 1:
        # Whole weight resident in VMEM, fetched once (no double buffering).
        w_spec = pl.BlockSpec((tk_, N), lambda i, k: (k, 0),
                              pipeline_mode=pl.Buffered(1))
    else:
        # Weight streamed along K, double-buffered DMA by default.
        w_spec = pl.BlockSpec((tk_, N), lambda i, k: (k, 0))

    out2d = pl.pallas_call(
        functools.partial(_bert_output_kernel, eps=eps),
        out_shape=jax.ShapeDtypeStruct((M, N), out_dtype),
        grid_spec=pltpu.PrefetchScalarGridSpec(
            num_scalar_prefetch=0,
            grid=(grid_m, grid_k),
            in_specs=[
                pl.BlockSpec((tm_, tk_), lambda i, k: (i, k)),  # x row tile
                w_spec,                                         # weight chunk
                _param_spec(),                                  # bias
                pl.BlockSpec((tm_, N), lambda i, k: (i, 0)),    # residual tile
                _param_spec(),                                  # gamma
                _param_spec(),                                  # beta
            ],
            out_specs=pl.BlockSpec((tm_, N), lambda i, k: (i, 0)),
            scratch_shapes=[pltpu.VMEM((tm_, N), jnp.float32)],
        ),
        compiler_params=pltpu.CompilerParams(
            dimension_semantics=("parallel", "arbitrary"),
            vmem_limit_bytes=vmem_limit),
    )(x2d, w, b2d, res2d, g2d, beta2d)

    return out2d.reshape(B, S, N)


def _reference(hidden_states, input_tensor, w, b, gamma, beta, eps=1e-12):
    y = jnp.einsum("bsk,kn->bsn", hidden_states, w,
                   precision=jax.lax.Precision.HIGHEST) + b
    y = y + input_tensor
    mean = jnp.mean(y, axis=-1, keepdims=True)
    var = jnp.mean((y - mean) ** 2, axis=-1, keepdims=True)
    return (y - mean) * jax.lax.rsqrt(var + eps) * gamma + beta


def _run_case(key, B, S, H, I, eps=1e-12, atol=2e-3, **kwargs):
    k1, k2, k3, k4, k5, k6 = jax.random.split(key, 6)
    hidden_states = jax.random.normal(k1, (B, S, I), dtype=jnp.float32)
    input_tensor = jax.random.normal(k2, (B, S, H), dtype=jnp.float32)
    # PyTorch nn.Linear stores weight as [out, in]; the kernel takes it
    # pre-transposed as [in, out].
    w = jax.random.normal(k3, (I, H), dtype=jnp.float32) * 0.02
    b = jax.random.normal(k4, (H,), dtype=jnp.float32) * 0.02
    gamma = 1.0 + 0.1 * jax.random.normal(k5, (H,), dtype=jnp.float32)
    beta = 0.1 * jax.random.normal(k6, (H,), dtype=jnp.float32)

    out = bert_output(hidden_states, input_tensor, w, b, gamma, beta,
                      eps=eps, **kwargs)
    out = jax.block_until_ready(out)

    ref = _reference(hidden_states, input_tensor, w, b, gamma, beta, eps=eps)
    assert out.shape == (B, S, H)
    err = float(jnp.max(jnp.abs(out - ref)))
    assert jnp.allclose(out, ref, atol=atol, rtol=atol), (
        f"mismatch vs reference (B={B} S={S} H={H} I={I} kwargs={kwargs}): "
        f"max abs err {err:.3e}")


if __name__ == "__main__":
    key = jax.random.PRNGKey(0)
    k_a, k_b, k_c, k_d = jax.random.split(key, 4)

    # Tiny M: auto plan picks tm=8 with 2 row tiles (keeps both v7x TCs busy).
    _run_case(k_a, B=2, S=8, H=128, I=512)
    # Forced tm=256 with M=400: exercises the masked partial tail row tile
    # (no wrapper-side padding anymore).
    _run_case(k_b, B=2, S=200, H=128, I=512, tm=256)
    # Forced tk=256: exercises the K-streaming accumulator path (grid_k=2).
    _run_case(k_c, B=2, S=8, H=128, I=512, tk=256)
    # bf16 matmul operands (the main v6e/v7x HBM-bandwidth lever); looser tol.
    _run_case(k_d, B=2, S=8, H=128, I=512,
              matmul_dtype=jnp.bfloat16, atol=5e-2)

    print("KERNEL_OK")
</pallas_src>

<mosaic_0001>
module attributes {stable_mosaic.version = 11 : i64} {
  func.func @_bert_output_kernel(%arg0: i32, %arg1: i32, %arg2: memref<8x512xf32, #tpu.memory_space<vmem>>, %arg3: memref<512x128xf32, #tpu.memory_space<vmem>>, %arg4: memref<1x128xf32, #tpu.memory_space<vmem>>, %arg5: memref<8x128xf32, #tpu.memory_space<vmem>>, %arg6: memref<1x128xf32, #tpu.memory_space<vmem>>, %arg7: memref<1x128xf32, #tpu.memory_space<vmem>>, %arg8: memref<8x128xf32, #tpu.memory_space<vmem>>, %arg9: memref<8x128xf32, #tpu.memory_space<vmem>>) attributes {dimension_semantics = [#tpu.dimension_semantics<parallel>, #tpu.dimension_semantics<arbitrary>], iteration_bounds = array<i64: 2, 1>, scalar_prefetch = 0 : i64, scratch_operands = 1 : i64, tpu.core_type = #tpu.core_type<tc>, window_params = [{transform_indices = @transform_0, window_bounds = array<i64: 8, 512>}, {pipeline_mode = #tpu.pipeline_mode<synchronous>, transform_indices = @transform_1, window_bounds = array<i64: 512, 128>}, {pipeline_mode = #tpu.pipeline_mode<synchronous>, transform_indices = @transform_2, window_bounds = array<i64: 1, 128>}, {transform_indices = @transform_3, window_bounds = array<i64: 8, 128>}, {pipeline_mode = #tpu.pipeline_mode<synchronous>, transform_indices = @transform_4, window_bounds = array<i64: 1, 128>}, {pipeline_mode = #tpu.pipeline_mode<synchronous>, transform_indices = @transform_5, window_bounds = array<i64: 1, 128>}, {transform_indices = @transform_6, window_bounds = array<i64: 8, 128>}]} {
    %c0_i32 = arith.constant 0 : i32
    %0 = arith.cmpi eq, %arg1, %c0_i32 : i32
    %1 = arith.extui %0 : i1 to i32
    %c0_i32_0 = arith.constant 0 : i32
    %2 = arith.cmpi ne, %1, %c0_i32_0 : i32
    scf.if %2 {
      %cst_10 = arith.constant 0.000000e+00 : f32
      %12 = vector.broadcast %cst_10 : f32 to vector<8x128xf32>
      %c0_11 = arith.constant 0 : index
      %c0_12 = arith.constant 0 : index
      %13 = vector.load %arg9[%c0_11, %c0_12] : memref<8x128xf32, #tpu.memory_space<vmem>>, vector<8x128xf32>
      tpu.vector_store %arg9[%c0_11, %c0_12], %12 {strides = array<i32>} : memref<8x128xf32, #tpu.memory_space<vmem>>, vector<8x128xf32>,
    } else {
    }
    %c0 = arith.constant 0 : index
    %c0_1 = arith.constant 0 : index
    %3 = vector.load %arg9[%c0, %c0_1] : memref<8x128xf32, #tpu.memory_space<vmem>>, vector<8x128xf32>
    %c0_2 = arith.constant 0 : index
    %c0_3 = arith.constant 0 : index
    %4 = vector.load %arg2[%c0_2, %c0_3] : memref<8x512xf32, #tpu.memory_space<vmem>>, vector<8x512xf32>
    %c0_4 = arith.constant 0 : index
    %c0_5 = arith.constant 0 : index
    %5 = vector.load %arg3[%c0_4, %c0_5] : memref<512x128xf32, #tpu.memory_space<vmem>>, vector<512x128xf32>
    %cst = arith.constant dense<0.000000e+00> : vector<8x128xf32>
    %6 = tpu.matmul %4, %5, %cst {dimension_numbers = #tpu.dot_dimension_numbers<[1], [0], [0], [1], [0, 0, 1, 1], [], []>} : vector<8x512xf32>, vector<512x128xf32>, vector<8x128xf32> -> vector<8x128xf32>
    %7 = arith.addf %3, %6 : vector<8x128xf32>
    %c0_6 = arith.constant 0 : index
    %c0_7 = arith.constant 0 : index
    %8 = vector.load %arg9[%c0_6, %c0_7] : memref<8x128xf32, #tpu.memory_space<vmem>>, vector<8x128xf32>
    tpu.vector_store %arg9[%c0_6, %c0_7], %7 {strides = array<i32>} : memref<8x128xf32, #tpu.memory_space<vmem>>, vector<8x128xf32>,
    %c0_i32_8 = arith.constant 0 : i32
    %9 = arith.cmpi eq, %arg1, %c0_i32_8 : i32
    %10 = arith.extui %9 : i1 to i32
    %c0_i32_9 = arith.constant 0 : i32
    %11 = arith.cmpi ne, %10, %c0_i32_9 : i32
    scf.if %11 {
      %c0_10 = arith.constant 0 : index
      %c0_11 = arith.constant 0 : index
      %12 = vector.load %arg9[%c0_10, %c0_11] : memref<8x128xf32, #tpu.memory_space<vmem>>, vector<8x128xf32>
      %c0_12 = arith.constant 0 : index
      %c0_13 = arith.constant 0 : index
      %13 = vector.load %arg5[%c0_12, %c0_13] : memref<8x128xf32, #tpu.memory_space<vmem>>, vector<8x128xf32>
      %14 = arith.addf %12, %13 : vector<8x128xf32>
      %c0_14 = arith.constant 0 : index
      %c0_15 = arith.constant 0 : index
      %15 = vector.load %arg4[%c0_14, %c0_15] : memref<1x128xf32, #tpu.memory_space<vmem>>, vector<1x128xf32>
      %16 = vector.broadcast %15 : vector<1x128xf32> to vector<8x128xf32>
      %17 = arith.addf %14, %16 : vector<8x128xf32>
      %cst_16 = arith.constant dense<0.000000e+00> : vector<8xf32>
      %18 = vector.multi_reduction <add>, %17, %cst_16 [1] : vector<8x128xf32> to vector<8xf32>
      %19 = vector.shape_cast %18 : vector<8xf32> to vector<8x1xf32>
      %cst_17 = arith.constant 1.280000e+02 : f32
      %20 = vector.broadcast %cst_17 : f32 to vector<8x1xf32>
      %21 = arith.divf %19, %20 : vector<8x1xf32>
      %22 = arith.mulf %17, %17 : vector<8x128xf32>
      %cst_18 = arith.constant dense<0.000000e+00> : vector<8xf32>
      %23 = vector.multi_reduction <add>, %22, %cst_18 [1] : vector<8x128xf32> to vector<8xf32>
      %24 = vector.shape_cast %23 : vector<8xf32> to vector<8x1xf32>
      %cst_19 = arith.constant 1.280000e+02 : f32
      %25 = vector.broadcast %cst_19 : f32 to vector<8x1xf32>
      %26 = arith.divf %24, %25 : vector<8x1xf32>
      %27 = arith.mulf %21, %21 : vector<8x1xf32>
      %28 = arith.subf %26, %27 : vector<8x1xf32>
      %cst_20 = arith.constant 0.000000e+00 : f32
      %29 = vector.broadcast %cst_20 : f32 to vector<8x1xf32>
      %30 = arith.maximumf %28, %29 : vector<8x1xf32>
      %cst_21 = arith.constant 9.99999996E-13 : f32
      %31 = vector.broadcast %cst_21 : f32 to vector<8x1xf32>
      %32 = arith.addf %30, %31 : vector<8x1xf32>
      %33 = math.rsqrt %32 : vector<8x1xf32>
      %c0_22 = arith.constant 0 : index
      %c0_23 = arith.constant 0 : index
      %34 = vector.load %arg6[%c0_22, %c0_23] : memref<1x128xf32, #tpu.memory_space<vmem>>, vector<1x128xf32>
      %c0_24 = arith.constant 0 : index
      %c0_25 = arith.constant 0 : index
      %35 = vector.load %arg7[%c0_24, %c0_25] : memref<1x128xf32, #tpu.memory_space<vmem>>, vector<1x128xf32>
      %36 = vector.broadcast %21 : vector<8x1xf32> to vector<8x128xf32>
      %37 = arith.subf %17, %36 : vector<8x128xf32>
      %38 = vector.broadcast %33 : vector<8x1xf32> to vector<8x128xf32>
      %39 = arith.mulf %37, %38 : vector<8x128xf32>
      %40 = vector.broadcast %34 : vector<1x128xf32> to vector<8x128xf32>
      %41 = arith.mulf %39, %40 : vector<8x128xf32>
      %42 = vector.broadcast %35 : vector<1x128xf32> to vector<8x128xf32>
      %43 = arith.addf %41, %42 : vector<8x128xf32>
      %c0_26 = arith.constant 0 : index
      %c0_27 = arith.constant 0 : index
      %44 = vector.load %arg8[%c0_26, %c0_27] : memref<8x128xf32, #tpu.memory_space<vmem>>, vector<8x128xf32>
      tpu.vector_store %arg8[%c0_26, %c0_27], %43 {strides = array<i32>} : memref<8x128xf32, #tpu.memory_space<vmem>>, vector<8x128xf32>,
    } else {
    }
    return
  }
  func.func @transform_0(%arg0: i32, %arg1: i32) -> (i32, i32) {
    %c0_i32 = arith.constant 0 : i32
    return %arg0, %arg1 : i32, i32
  }
  func.func @transform_1(%arg0: i32, %arg1: i32) -> (i32, i32) {
    %c0_i32 = arith.constant 0 : i32
    %c0_i32_0 = arith.constant 0 : i32
    return %arg1, %c0_i32 : i32, i32
  }
  func.func @transform_2(%arg0: i32, %arg1: i32) -> (i32, i32) {
    %c0_i32 = arith.constant 0 : i32
    %c0_i32_0 = arith.constant 0 : i32
    %c0_i32_1 = arith.constant 0 : i32
    return %c0_i32, %c0_i32_0 : i32, i32
  }
  func.func @transform_3(%arg0: i32, %arg1: i32) -> (i32, i32) {
    %c0_i32 = arith.constant 0 : i32
    %c0_i32_0 = arith.constant 0 : i32
    return %arg0, %c0_i32 : i32, i32
  }
  func.func @transform_4(%arg0: i32, %arg1: i32) -> (i32, i32) {
    %c0_i32 = arith.constant 0 : i32
    %c0_i32_0 = arith.constant 0 : i32
    %c0_i32_1 = arith.constant 0 : i32
    return %c0_i32, %c0_i32_0 : i32, i32
  }
  func.func @transform_5(%arg0: i32, %arg1: i32) -> (i32, i32) {
    %c0_i32 = arith.constant 0 : i32
    %c0_i32_0 = arith.constant 0 : i32
    %c0_i32_1 = arith.constant 0 : i32
    return %c0_i32, %c0_i32_0 : i32, i32
  }
  func.func @transform_6(%arg0: i32, %arg1: i32) -> (i32, i32) {
    %c0_i32 = arith.constant 0 : i32
    %c0_i32_0 = arith.constant 0 : i32
    return %arg0, %c0_i32 : i32, i32
  }
}

</mosaic_0001>

<bundles_post_ra>
// kernel: tpu_custom_call.1
= control target key start
LH: loop header
LB: loop body
LE: loop exit
PB: predicated region body
PF: predicated region fallthrough
CT: control target
= control target key end

     0   :  { %s1204_s0 = inlined_call_operand.hbm [shape: f32[16,512], index: 0, kind: input, shape index: {}]   ;;  %s1205_s1 = inlined_call_operand.hbm [shape: f32[512,128], index: 1, kind: input, shape index: {}]   ;;  %s1206_s2 = inlined_call_operand.vmem [shape: f32[1,128], index: 2, kind: input, shape index: {}]   ;;  %s1207_s3 = inlined_call_operand.hbm [shape: f32[16,128], index: 3, kind: input, shape index: {}]   ;;  %s1208_s4 = inlined_call_operand.vmem [shape: f32[1,128], index: 4, kind: input, shape index: {}]   ;;  %s1209_s5 = inlined_call_operand.vmem [shape: f32[1,128], index: 5, kind: input, shape index: {}]   ;;  %s1210_s6 = inlined_call_operand.hbm [shape: f32[16,128], index: 6, kind: output, shape index: {}]  }
   0x1   :  { %1213 = sst [smem:[#allocation17_spill]] %s1204_s0 }
   0x2   :  { %1214 = sst [smem:[#allocation18_spill]] %s1205_s1 }
   0x3   :  { %11 = vsyncpa [#allocation4], 0 }
   0x4   :  { %13 = vsyncpa [#allocation4 + $0x1], 0 }
   0x5   :  { %14 = vsyncpa [#allocation7], 0 }
   0x6   :  { %15 = vsyncpa [#allocation5], 0 }
   0x7   :  { %17 = vsyncpa [#allocation5 + $0x1], 0  ;;  %s1015_s21 = smov 0   ;;  %s1017_s22 = smov 0  }
   0x8   :  { %s1019_s23 = smov 0   ;;  %s1021_s24 = smov 0  }
   0x9   :  { %s1023_s25 = smov 0   ;;  %s1025_s26 = smov 0  }
   0xa LB: > { %1215 = sst [smem:[#allocation14_spill]] %s970_s25  ;;  %s1046_s27 = sadd.s32 4294967295, %s974_s26   ;;  %s974_s26 = sphi %s1025_s26, %s23_s26   ;;  %s970_s25 = sphi %s1023_s25, %s1228_s25   ;;  %s966_s24 = sphi %s1021_s24, %s1227_s24   ;;  %s962_s23 = sphi %s1019_s23, %s1231_s23   ;;  %s958_s22 = sphi %s1017_s22, %s1230_s22   ;;  %s954_s21 = sphi %s1015_s21, %s1229_s21  }
   0xb   : > { %s687_s28 = sadd.s32 4294967294, %s974_s26   ;;  %s35_s29 = sadd.s32 1, %s970_s25 }
   0xc   : > { %s44_s30 = sadd.s32 1, %s962_s23  ;;  %p37_p0 = scmp.ge.s32.totalorder %s35_s29, 2 }
   0xd   : > { %p51_p1 = scmp.ne.s32.totalorder %s962_s23, %s958_s22  ;;  %p52_p2 = scmp.eq.s32.totalorder %s974_s26, 0 }
   0xe   : > { %p57_p3 = scmp.ne.s32.totalorder %s958_s22, %s954_s21  ;;  %s1233_s29 = smov (%p37_p0, %s35_s29), 0 }
   0xf   : > { %1216 = sst [smem:[#allocation15_spill]] %s1233_s29  ;;  %p1058_p4 = por %p52_p2, %p51_p1 }
  0x10   : > { %p196_p5 = scmp.eq.s32.totalorder %s1046_s27, 1  ;;  %s39_s8 = ssub.s32 %s970_s25, %s1233_s29 }
  0x11   : > { %p202_p6 = scmp.eq.s32.totalorder %s687_s28, 1  ;;  %p42_p7 = scmp.eq.s32.totalorder %s39_s8, 0 }
  0x12   : > { %p1065_p8 = por %p196_p5, %p51_p1  ;;  %p690_p10 = scmp.ge.s32.totalorder %s974_s26, 2 }
  0x13   : > { %p1072_p9 = por %p202_p6, %p57_p3  ;;  %p732_p11 = scmp.lt.s32.totalorder %s974_s26, 2 }
  0x14   : > { %s1077_s11 = scalar_select %p42_p7, %s962_s23, %s44_s30  }
  0x15   : > { %s248_s12 = sand.u32 1, %s974_s26   ;;  %s250_s13 = sand.u32 1, %s962_s23  }
  0x16   : > { %1220 = sst [smem:[#allocation16_spill]] %s1077_s11  ;;  %s691_s14 = sshll.u32 %s250_s13, 5 }
  0x17   : > { %s705_s15 = sshll.u32 %s970_s25, 5  ;;  %s1221_s0 = sld [smem:[#allocation17_spill]] }
  0x18   : > { %s252_s19 = scalar_lea.vmem [#allocation3], %s691_s14  ;;  %p1089_p12 = pnand %p732_p11, %p1058_p4 }
  0x19   : > { %s263_s20 = sshll.u32 %s252_s19, 4  ;;  %s694_s8 = sshll.u32 %s250_s13, 3  ;;  %s264_s20 = int_to_ptr.vmem [resolvable:$true] %s263_s20 }
  0x1a   : > { %s249_s29 = scalar_lea.sflag [#allocation4], %s248_s12  ;;  %p58_p13 = scmp.eq.s32.totalorder %s1046_s27, 0 }
  0x1b   : > { %p688_p0 = scmp.ge.s32.totalorder %s974_s26, 1  ;;  %p209_p1 = scmp.lt.s32.totalorder %s974_s26, 3 }
  0x1c   : > { %s1223_s1 = sld [smem:[#allocation18_spill]]  ;;  %p1106_p2 = por %p58_p13, %p57_p3 }
  0x1d   : > { %s259_s18 = scalar_lea.hbm %s1221_s0, %s705_s15  ;;  %p1110_p4 = pnand %p688_p0, %p209_p1 }
  0x1e   : > { %s261_s28 = sshll.u32 %s259_s18, 4  ;;  %s976_s12 = smov [#allocation6]   ;;  %s262_s28 = int_to_ptr.hbm [resolvable:$true] %s261_s28 }
  0x1f   : > { %723 = dma.hbm_to_vmem [thread:$0]  (!%p1089_p12), %s262_s28, 512, %s264_s20, %s249_s29  }
  0x20   : > { %s225_s13 = sshll.u32 %s976_s12, 4  ;;  %p716_p5 = pneg %p1110_p4  ;;  %s226_s13 = int_to_ptr.vmem [resolvable:$true] %s225_s13 }
  0x21   : > { %s695_s18 = sshll.u32 %s970_s25, 3  ;;  %s274_s14 = scalar_lea.vmem [#allocation8], %s694_s8 }
  0x22   : > { %s223_s16 = sshll.u32 %s1223_s1, 4  ;;  %p717_p6 = pnand %p716_p5, %p58_p13  ;;  %s224_s16 = int_to_ptr.hbm [resolvable:$true] %s223_s16 }
  0x23   : > { %s278_s28 = scalar_lea.hbm %s1207_s3, %s695_s18  ;;  %s282_s15 = sshll.u32 %s274_s14, 4  ;;  %s283_s15 = int_to_ptr.vmem [resolvable:$true] %s282_s15 }
  0x24   : > { %s280_s0 = sshll.u32 %s278_s28, 4  ;;  %s977_s1 = smov 128   ;;  %s281_s0 = int_to_ptr.hbm [resolvable:$true] %s280_s0 }
  0x25   : > { %s978_s11 = smov 8   ;;  %291 = sbr.rel (%p1110_p4) target bundleno = 381 (0x17d), region = 44 }
  0x26   : > { %719 = dma.hbm_to_vmem [thread:$0]  (!%p717_p6), %s224_s16, 8192, %s226_s13, [#allocation7], %s977_s1, %s977_s1, %s978_s11  }
  0x27   : > { %726 = dma.hbm_to_vmem [thread:$0]  (!%p1089_p12), %s281_s0, 128, %s283_s15, %s249_s29  }
  0x28   : > { %s293_s12 = sand.u32 (!%p1110_p4), 1, %s1046_s27   ;;  %s1128_s25 = sand.u32 (!%p1110_p4), 1, %s958_s22  }
  0x29   : > { %s697_s8 = sshll.u32 (!%p1110_p4), %s1128_s25, 5  ;;  %s294_s18 = scalar_lea.sflag (!%p1110_p4), [#allocation4], %s293_s12 }
  0x2a   : > { %s1131_s19 = scalar_lea.vmem [#allocation3], %s697_s8 }
  0x2b   : > { %937 = dma.done.wait (%p1106_p2), %s294_s18, 512  }
  0x2c   : > { %939 = vsyncadd (%p1106_p2), %s294_s18, 4294966784 }
  0x2d   : > { %941 = dma.done.wait (%p58_p13), [#allocation7], 8192  }
  0x2e   : > { %943 = vsyncadd (%p58_p13), [#allocation7], 4294959104  ;;  %s699_s0 = sshll.u32 %s1128_s25, 3 }
  0x2f   : > { %s1144_s1 = scalar_lea.vmem [#allocation8], %s699_s0 }
  0x30   : > { %945 = dma.done.wait (%p1106_p2), %s294_s18, 128  }
  0x31   : > { %947 = vsyncadd (%p1106_p2), %s294_s18, 4294967168  ;;  %v406_v0 = vld [vmem:[#allocation6 + $0x178] sm:$0xff]  ;;  %v405_v1 = vld [vmem:[#allocation6 + $0x170] sm:$0xff]  ;;  %s702_s11 = sshll.u32 %s966_s24, 3  ;;  %s346_s24 = scalar_lea.vmem [#allocation9], %s699_s0 }
  0x32   : > { %v422_v2 = vld [vmem:[#allocation6 + $0x1f8] sm:$0xff]  ;;  %463 = vmatpush.msra.mxu2 %v406_v0  ;;  %v404_v5 = vld [vmem:[#allocation6 + $0x168] sm:$0xff]  ;;  %v421_v6 = vld [vmem:[#allocation6 + $0x1f0] sm:$0xff]  ;;  %s568_s13 = scalar_lea.hbm %s1210_s6, %s702_s11  ;;  %s570_s14 = sshll.u32 %s346_s24, 4  ;;  %s571_s14 = int_to_ptr.vmem [resolvable:$true] %s570_s14 }
  0x33   : > { %483 = vmatpush.msra.mxu3 %v422_v2  ;;  %v374_v3 = vld [vmem:[#allocation6 + $0x78] sm:$0xff]  ;;  %v373_v7 = vld [vmem:[#allocation6 + $0x70] sm:$0xff]  ;;  %v420_v9 = vld [vmem:[#allocation6 + $0x1e8] sm:$0xff]  ;;  %s572_s15 = sshll.u32 %s568_s13, 4  ;;  %s558_s12 = scalar_lea.sflag [#allocation5], %s1128_s25  ;;  %s573_s15 = int_to_ptr.hbm [resolvable:$true] %s572_s15 }
  0x34   : > { %v390_v4 = vld [vmem:[#allocation6 + $0xf8] sm:$0xff]  ;;  %423 = vmatpush.msra.mxu0 %v374_v3  ;;  %v389_v8 = vld [vmem:[#allocation6 + $0xf0] sm:$0xff]  ;;  %464 = vmatpush.msra.mxu2 %v405_v1  ;;  %v372_v10 = vld [vmem:[#allocation6 + $0x68] sm:$0xff]  ;;  %s898_s8 = sshra.s32 %s573_s15, 4  ;;  %s904_s27 = scalar_lea.hbm %s1210_s6, 16  ;;  %s899_s8 = int_to_ptr.hbm [resolvable:$true] %s898_s8 }
  0x35   : > { %443 = vmatpush.msra.mxu1 %v390_v4  ;;  %484 = vmatpush.msra.mxu3 %v421_v6  ;;  %v403_v11 = vld [vmem:[#allocation6 + $0x160] sm:$0xff]  ;;  %v388_v12 = vld [vmem:[#allocation6 + $0xe8] sm:$0xff]  ;;  %v402_v16 = vld [vmem:[#allocation6 + $0x158] sm:$0xff]  ;;  %s900_s18 = scalar_lea.hbm %s899_s8, 8  ;;  %p905_p12 = scmp.lt.s32.totalorder %s899_s8, %s1210_s6 }
  0x36   : > { %424 = vmatpush.msra.mxu0 %v373_v7  ;;  %v419_v13 = vld [vmem:[#allocation6 + $0x1e0] sm:$0xff]  ;;  %465 = vmatpush.msra.mxu2 %v404_v5  ;;  %v418_v17 = vld [vmem:[#allocation6 + $0x1d8] sm:$0xff]  ;;  %v401_v20 = vld [vmem:[#allocation6 + $0x150] sm:$0xff]  ;;  %p901_p3 = scmp.ne.s32.totalorder %s899_s8, %s900_s18  ;;  %p906_p13 = scmp.lt.s32.totalorder %s904_s27, %s900_s18 }
  0x37   : > { %444 = vmatpush.msra.mxu1 %v389_v8  ;;  %485 = vmatpush.msra.mxu3 %v420_v9  ;;  %v371_v14 = vld [vmem:[#allocation6 + $0x60] sm:$0xff]  ;;  %v370_v18 = vld [vmem:[#allocation6 + $0x58] sm:$0xff]  ;;  %v417_v21 = vld [vmem:[#allocation6 + $0x1d0] sm:$0xff] }
  0x38   : > { %v387_v15 = vld [vmem:[#allocation6 + $0xe0] sm:$0xff]  ;;  %425 = vmatpush.msra.mxu0 %v372_v10  ;;  %466 = vmatpush.msra.mxu2 %v403_v11  ;;  %v386_v19 = vld [vmem:[#allocation6 + $0xd8] sm:$0xff]  ;;  %v369_v22 = vld [vmem:[#allocation6 + $0x50] sm:$0xff]  ;;  %p902_p7 = pnand %p901_p3, %p1065_p8  ;;  %p907_p0 = por %p906_p13, %p905_p12 }
  0x39   : > { %445 = vmatpush.msra.mxu1 %v388_v12  ;;  %486 = vmatpush.msra.mxu3 %v419_v13  ;;  %v385_v23 = vld [vmem:[#allocation6 + $0xd0] sm:$0xff]  ;;  %v400_v24 = vld [vmem:[#allocation6 + $0x148] sm:$0xff]  ;;  %v399_v28 = vld [vmem:[#allocation6 + $0x140] sm:$0xff] }
  0x3a   : > { %426 = vmatpush.msra.mxu0 %v371_v14  ;;  %467 = vmatpush.msra.mxu2 %v402_v16  ;;  %v416_v25 = vld [vmem:[#allocation6 + $0x1c8] sm:$0xff]  ;;  %v415_v29 = vld [vmem:[#allocation6 + $0x1c0] sm:$0xff]  ;;  %v398_v32 = vld [vmem:[#allocation6 + $0x138] sm:$0xff]  ;;  %v979_v16 = vmov 128.0   ;;  %p903_p11 = pneg %p902_p7 }
  0x3b   : > { %446 = vmatpush.msra.mxu1 %v387_v15  ;;  %487 = vmatpush.msra.mxu3 %v418_v17  ;;  %v368_v26 = vld [vmem:[#allocation6 + $0x48] sm:$0xff]  ;;  %v367_v30 = vld [vmem:[#allocation6 + $0x40] sm:$0xff]  ;;  %v414_v33 = vld [vmem:[#allocation6 + $0x1b8] sm:$0xff]  ;;  %790 = vrcp.f32 %v979_v16 }
  0x3c   : > { %427 = vmatpush.msra.mxu0 %v370_v18  ;;  %468 = vmatpush.msra.mxu2 %v401_v20  ;;  %v384_v27 = vld [vmem:[#allocation6 + $0xc8] sm:$0xff]  ;;  %v383_v31 = vld [vmem:[#allocation6 + $0xc0] sm:$0xff]  ;;  %v366_v34 = vld [vmem:[#allocation6 + $0x38] sm:$0xff]  ;;  %p908_p1 = pnand %p907_p0, %p903_p11 }
  0x3d   : > { %447 = vmatpush.msra.mxu1 %v386_v19  ;;  %488 = vmatpush.msra.mxu3 %v417_v21  ;;  %v382_v35 = vld [vmem:[#allocation6 + $0xb8] sm:$0xff]  ;;  %v397_v36 = vld [vmem:[#allocation6 + $0x130] sm:$0xff]  ;;  %v396_v40 = vld [vmem:[#allocation6 + $0x128] sm:$0xff] }
  0x3e   : > { %428 = vmatpush.msra.mxu0 %v369_v22  ;;  %469 = vmatpush.msra.mxu2 %v400_v24  ;;  %v413_v37 = vld [vmem:[#allocation6 + $0x1b0] sm:$0xff]  ;;  %v412_v41 = vld [vmem:[#allocation6 + $0x1a8] sm:$0xff]  ;;  %v395_v44 = vld [vmem:[#allocation6 + $0x120] sm:$0xff] }
  0x3f   : > { %448 = vmatpush.msra.mxu1 %v385_v23  ;;  %489 = vmatpush.msra.mxu3 %v416_v25  ;;  %v365_v38 = vld [vmem:[#allocation6 + $0x30] sm:$0xff]  ;;  %v364_v42 = vld [vmem:[#allocation6 + $0x28] sm:$0xff]  ;;  %v411_v45 = vld [vmem:[#allocation6 + $0x1a0] sm:$0xff] }
  0x40   : > { %429 = vmatpush.msra.mxu0 %v368_v26  ;;  %470 = vmatpush.msra.mxu2 %v399_v28  ;;  %v381_v39 = vld [vmem:[#allocation6 + $0xb0] sm:$0xff]  ;;  %v380_v43 = vld [vmem:[#allocation6 + $0xa8] sm:$0xff]  ;;  %v394_v46 = vld [vmem:[#allocation6 + $0x118] sm:$0xff] }
  0x41   : > { %449 = vmatpush.msra.mxu1 %v384_v27  ;;  %490 = vmatpush.msra.mxu3 %v415_v29  ;;  %v363_v47 = vld [vmem:[#allocation6 + $0x20] sm:$0xff]  ;;  %v410_v49 = vld [vmem:[#allocation6 + $0x198] sm:$0xff]  ;;  %v393_v52 = vld [vmem:[#allocation6 + $0x110] sm:$0xff]  ;;  %v791_v17 = vpop.eup %790 }
  0x42   : > { %430 = vmatpush.msra.mxu0 %v367_v30  ;;  %471 = vmatpush.msra.mxu2 %v398_v32  ;;  %v379_v48 = vld [vmem:[#allocation6 + $0xa0] sm:$0xff]  ;;  %v362_v50 = vld [vmem:[#allocation6 + $0x18] sm:$0xff]  ;;  %v409_v53 = vld [vmem:[#allocation6 + $0x190] sm:$0xff]  ;;  %v519_v18 = vmul.f32 128.0, %v791_v17  ;;  %vm523_vm0 = vweird.f32 %v791_v17 }
  0x43   : > { %450 = vmatpush.msra.mxu1 %v383_v31  ;;  %491 = vmatpush.msra.mxu3 %v414_v33  ;;  %v378_v51 = vld [vmem:[#allocation6 + $0x98] sm:$0xff]  ;;  %v361_v54 = vld [vmem:[#allocation6 + $0x10] sm:$0xff]  ;;  %v392_v56 = vld [vmem:[#allocation6 + $0x108] sm:$0xff] }
  0x44   : > { %431 = vmatpush.msra.mxu0 %v366_v34  ;;  %472 = vmatpush.msra.mxu2 %v397_v36  ;;  %v377_v55 = vld [vmem:[#allocation6 + $0x90] sm:$0xff]  ;;  %v408_v57 = vld [vmem:[#allocation6 + $0x188] sm:$0xff]  ;;  %v391_v60 = vld [vmem:[#allocation6 + $0x100] sm:$0xff]  ;;  %v520_v19 = vsub.f32 1.0, %v519_v18 }
  0x45   : > { %451 = vmatpush.msra.mxu1 %v382_v35  ;;  %492 = vmatpush.msra.mxu3 %v413_v37  ;;  %v360_v58 = vld [vmem:[#allocation6 + $0x8] sm:$0xff]  ;;  %v407_v61 = vld [vmem:[#allocation6 + $0x180] sm:$0xff]  ;;  %v357_v62 = vld [vmem:[%s1131_s19 + $0x10] sm:$0xff] }
  0x46   : > { %432 = vmatpush.msra.mxu0 %v365_v38  ;;  %473 = vmatpush.msra.mxu2 %v396_v40  ;;  %v376_v59 = vld [vmem:[#allocation6 + $0x88] sm:$0xff]  ;;  %v358_v63 = vld [vmem:[%s1131_s19 + $0x18] sm:$0xff]  ;;  %v359_v0 = vld [vmem:[#allocation6] sm:$0xff]  ;;  %v521_v20 = vmul.f32 %v791_v17, %v520_v19 }
  0x47   : > { %452 = vmatpush.msra.mxu1 %v381_v39  ;;  %493 = vmatpush.msra.mxu3 %v412_v41  ;;  %v375_v1 = vld [vmem:[#allocation6 + $0x80] sm:$0xff]  ;;  %v356_v3 = vld [vmem:[%s1131_s19 + $0x8] sm:$0xff] }
  0x48   : > { %433 = vmatpush.msra.mxu0 %v364_v42  ;;  %474 = vmatpush.msra.mxu2 %v395_v44  ;;  %v355_v2 = vld [vmem:[%s1131_s19] sm:$0xff]  ;;  %v522_v21 = vadd.f32 %v791_v17, %v521_v20 }
  0x49   : > { %453 = vmatpush.msra.mxu1 %v380_v43  ;;  %494 = vmatpush.msra.mxu3 %v411_v45  ;;  %v509_v10 = vld [vmem:[%s1144_s1] sm:$0xff] }
  0x4a   : > { %434 = vmatpush.msra.mxu0 %v363_v47  ;;  %475 = vmatpush.msra.mxu2 %v394_v46  ;;  %v787_v12 = vld [vmem:[%s1206_s2] ss:$0 sm:$0xff]  ;;  %v524_v23 = vsel %vm523_vm0, %v791_v17, %v522_v21 }
  0x4b   : > { %454 = vmatpush.msra.mxu1 %v379_v48  ;;  %495 = vmatpush.msra.mxu3 %v410_v49  ;;  %v788_v38 = vld [vmem:[%s1208_s4] ss:$0 sm:$0xff] }
  0x4c   : > { %435 = vmatpush.msra.mxu0 %v362_v50  ;;  %476 = vmatpush.msra.mxu2 %v393_v52  ;;  %v789_v41 = vld [vmem:[%s1209_s5] ss:$0 sm:$0xff] }
  0x4d   : > { %455 = vmatpush.msra.mxu1 %v378_v51  ;;  %496 = vmatpush.msra.mxu3 %v409_v53 }
  0x4e   : > { %436 = vmatpush.msra.mxu0 %v361_v54  ;;  %477 = vmatpush.msra.mxu2 %v392_v56 }
  0x4f   : > { %456 = vmatpush.msra.mxu1 %v377_v55  ;;  %497 = vmatpush.msra.mxu3 %v408_v57 }
  0x50   : > { %437 = vmatpush.msra.mxu0 %v360_v58  ;;  %478 = vmatpush.msra.mxu2 %v391_v60 }
  0x51   : > { %457 = vmatpush.msra.mxu1 %v376_v59  ;;  %498 = vmatpush.msra.mxu3 %v407_v61 }
  0x52   : > { %479 = vmatmul.f32.vlgmr.msra.gmra.mxu2 %v357_v62  ;;  %499 = vmatmul.f32.vlgmr.msra.gmra.mxu3 %v358_v63 }
  0x53   : > { %438 = vmatpush.msra.mxu0 %v359_v0  ;;  %458 = vmatpush.msra.mxu1 %v375_v1 }
  0x54   : > { %439 = vmatmul.f32.vlgmr.msra.gmra.mxu0 %v355_v2  ;;  %459 = vmatmul.f32.vlgmr.msra.gmra.mxu1 %v356_v3 }
  0xd1   : > { %v440_v4 = vpop.f32.mrf.mxu0  ;;  %v460_v5 = vpop.f32.mrf.mxu1 }
  0xd2   : > { %v461_v6 = vadd.f32 %v460_v5, %v440_v4 }
  0xd5   : > { %v480_v7 = vpop.f32.mrf.mxu2  ;;  %v500_v8 = vpop.f32.mrf.mxu3 }
  0xd6   : > { %v481_v9 = vadd.f32 %v480_v7, %v461_v6 }
  0xd8   : > { %v501_v11 = vadd.f32 %v500_v8, %v481_v9 }
  0xda   : > { %v510_v13 = vadd.f32 %v509_v10, %v501_v11 }
  0xdc   : > { %v515_v14 = vadd.f32 %v787_v12, %v510_v13 }
  0xde   : > { %516 = vadd.xlane.f32.xlu0 %v515_v14  ;;  %v526_v15 = vmul.f32 %v515_v14, %v515_v14 }
  0xe6   : > { %527 = vadd.xlane.f32.xlu0 %v526_v15 }
 0x151   : > { %v517_v22 = vpop.xlane.xlu0 %516 }
 0x152   : > { %v525_v24 = vmul.f32 %v524_v23, %v517_v22 }
 0x154   : > { %v530_v26 = vmul.f32 %v525_v24, %v525_v24  ;;  %v546_v37 = vsub.f32 %v515_v14, %v525_v24 }
 0x159   : > { %v528_v25 = vpop.xlane.xlu0 %527 }
 0x15a   : > { %v529_v27 = vmul.f32 %v528_v25, %v524_v23 }
 0x15c   : > { %v531_v28 = vsub.f32 %v529_v27, %v530_v26 }
 0x15e   : > { %v532_v29 = vmax.f32 %v531_v28, 0.0 }
 0x160   : > { %v533_v30 = vadd.f32 1e-12, %v532_v29 }
 0x162   : > { %792 = vrsqrt.f32 %v533_v30  ;;  %vm540_vm2 = vweird.f32 %v533_v30 }
 0x168   : > { %v793_v31 = vpop.eup %792 }
 0x169   : > { %v535_v32 = vmul.f32 %v793_v31, %v533_v30  ;;  %vm541_vm1 = vweird.f32 %v793_v31 }
 0x16a   : > { %vm542_vm3 = vmor %vm540_vm2, %vm541_vm1 }
 0x16b   : > { %v536_v33 = vmul.f32 %v793_v31, %v535_v32 }
 0x16d   : > { %v537_v34 = vmul.f32 0.5, %v536_v33 }
 0x16f   : > { %v538_v35 = vsub.f32 1.5, %v537_v34 }
 0x171   : > { %v539_v36 = vmul.f32 %v793_v31, %v538_v35 }
 0x173   : > { %v543_v39 = vsel %vm542_vm3, %v793_v31, %v539_v36 }
 0x174   : > { %v547_v40 = vmul.f32 %v546_v37, %v543_v39 }
 0x176   : > { %v551_v42 = vmul.f32 %v788_v38, %v547_v40 }
 0x178   : > { %v555_v43 = vadd.f32 %v789_v41, %v551_v42 }
 0x17a   : > { %556 = vst [vmem:[%s346_s24] sm:$0xff] %v555_v43 }
 0x17b   : > { %911 = shalt.err (!%p908_p1)
}
 0x17c   : > { %714 = dma.vmem_to_hbm [thread:$0]  (%p1065_p8), %s571_s14, 128, %s573_s15, %s558_s12  }
 0x17d PF: > { %s584_s25 = sand.u32 1, %s954_s21   ;;  %p728_p2 = pnand %p690_p10, %p1072_p9 }
 0x17e   : > { %s585_s11 = scalar_lea.sflag [#allocation5], %s584_s25 }
 0x17f   : > { %p729_p4 = pneg %p728_p2 }
 0x181   : > { %949 = dma.done.wait (%p729_p4), %s585_s11, 128  }
 0x182   : > { %951 = vsyncadd (%p729_p4), %s585_s11, 4294967168  ;;  %s23_s26 = sadd.s32 1, %s974_s26   ;;  %s1226_s30 = sld [smem:[#allocation16_spill]] }
 0x183   : > { %p20_p5 = scmp.ge.s32.totalorder %s23_s26, 4   ;;  %s1227_s24 = sld [smem:[#allocation14_spill]] }
 0x184   : > { %s1228_s25 = sld [smem:[#allocation15_spill]]  ;;  %s1229_s21 = smov %s958_s22 }
 0x185   : > { %s1230_s22 = smov %s962_s23  ;;  %22 = sbr.rel (!%p20_p5) target bundleno = 10 (0xa), region = 113 }
 0x188   : > { %s1231_s23 = smov %s1226_s30 }
 0x18a   :  { %591 = vsyncpa [#allocation4], 1 }
 0x18b   :  { %593 = vsyncpa [#allocation4 + $0x1], 1 }
 0x18c   :  { %594 = vsyncpa [#allocation7], 1 }
 0x18d   :  { %595 = vsyncpa [#allocation5], 1 }
 0x18e   :  { %597 = vsyncpa [#allocation5 + $0x1], 1 }

</bundles_post_ra>
